<compile_context>
chip_gen: v6e
topology: v6e:2x2x1
jax: 0.10.0
libtpu: 0.0.40
codegen_flags: <defaults>
</compile_context>

<pallas_src>
import jax
import jax.numpy as jnp
from jax.experimental import pallas as pl
from jax.experimental.pallas import tpu as pltpu


def _ordinal_loss_ref(logits, targets):
    """Pure-JAX reference mirroring the PyTorch module (also the tiny-batch path)."""
    _, C = logits.shape
    col = jnp.arange(C)[None, :]
    y = (col < targets[:, None]).astype(jnp.float32)
    x = logits.astype(jnp.float32)
    per_elem = jnp.maximum(x, 0.0) - x * y + jnp.log1p(jnp.exp(-jnp.abs(x)))
    return jnp.mean(per_elem)


def _make_ordinal_loss_kernel(N: int, C: int, tile: int, has_tail: bool):
    """Kernel over row-major-flattened logits (1, N), batch*class tiled on lanes."""
    c_is_pow2 = (C & (C - 1)) == 0

    def kernel(logits_ref, targets_ref, out_ref):
        i = pl.program_id(0)

        x = logits_ref[...].astype(jnp.float32)        # (1, tile)
        t = targets_ref[...].astype(jnp.int32)         # (1, tile) expanded targets

        lane = jax.lax.broadcasted_iota(jnp.int32, (1, tile), 1)
        flat = i * tile + lane                          # global flat index = b*C + c
        cls = (flat & (C - 1)) if c_is_pow2 else jax.lax.rem(flat, C)

        # numerically-stable binary_cross_entropy_with_logits with the ordinal
        # target fused into a single select:
        #   max(x, 0) - x*[cls < t] + log1p(exp(-|x|))      (exp/log on the EUP)
        per_elem = (jnp.maximum(x, 0.0)
                    - jnp.where(cls < t, x, 0.0)
                    + jnp.log1p(jnp.exp(-jnp.abs(x))))

        def write(s):
            # lane-dense (8,128) block, one per grid step -> "parallel" grid axis.
            out_ref[...] = jnp.full((1, 8, 128), s, dtype=jnp.float32)

        if not has_tail:
            # Statically no ragged tail: zero masking work anywhere.
            write(jnp.sum(per_elem))
        else:
            last = pl.num_programs(0) - 1

            @pl.when(i < last)                          # full tiles: no mask ops
            def _full():
                write(jnp.sum(per_elem))

            @pl.when(i == last)                         # ragged tail: mask per_elem only
            def _tail():
                write(jnp.sum(jnp.where(flat < N, per_elem, 0.0)))

    return kernel


def ordinal_loss(logits: jax.Array, targets: jax.Array, *,
                 tile_n: int | None = None,
                 jax_fallback_elems: int = 1024) -> jax.Array:
    """logits: (B, C) float32/bf16, targets: (B,) int. Returns scalar f32 loss."""
    B, C = logits.shape
    N = B * C

    # Tiny batches (e.g. the module default B=8): XLA's fused elementwise+reduce
    # is strictly faster than kernel dispatch at this size.
    if N < jax_fallback_elems:
        return _ordinal_loss_ref(logits, targets)

    if tile_n is None:
        tile_n = 128 * 1024          # ~16 MiB total VMEM incl. double-buffering
    tile_n = int(min(tile_n, N))
    if tile_n < N:
        tile_n = max(128, (tile_n // 128) * 128)   # lane-aligned tiles
    num_tiles = pl.cdiv(N, tile_n)
    has_tail = (N % tile_n) != 0

    # Layout plumbing only — both are free/cheap, no transpose, no f32 copies.
    logits_flat = logits.reshape(1, N)                              # row-major bitcast
    tgt_dtype = jnp.int8 if C <= 127 else jnp.int32
    targets_flat = jnp.repeat(targets.astype(tgt_dtype), C).reshape(1, N)

    kernel = _make_ordinal_loss_kernel(N, C, tile_n, has_tail)

    partials = pl.pallas_call(
        kernel,
        out_shape=jax.ShapeDtypeStruct((num_tiles, 8, 128), jnp.float32),
        grid=(num_tiles,),
        in_specs=[
            pl.BlockSpec((1, tile_n), lambda i: (0, i)),   # logits tile
            pl.BlockSpec((1, tile_n), lambda i: (0, i)),   # expanded int8 targets
        ],
        out_specs=pl.BlockSpec((1, 8, 128), lambda i: (i, 0, 0)),  # per-block partial
        compiler_params=pltpu.CompilerParams(
            dimension_semantics=("parallel",),     # no cross-step state -> both TCs
            vmem_limit_bytes=32 * 1024 * 1024,     # safe on v5e/v6e/v7x
        ),
    )(logits_flat, targets_flat)

    # Trivial final reduction over a handful of per-block partial sums.
    return jnp.sum(partials[:, 0, 0]) * (1.0 / float(N))


if __name__ == "__main__":
    num_classes = 4
    key = jax.random.PRNGKey(0)
    k1, k2, k3, k4, k5, k6 = jax.random.split(key, 6)

    # 1) Kernel path, single full-extent block.
    b1 = 1024
    logits1 = jax.random.normal(k1, (b1, num_classes), dtype=jnp.float32)
    targets1 = jax.random.randint(k2, (b1,), 0, num_classes, dtype=jnp.int32)
    loss1 = jax.block_until_ready(ordinal_loss(logits1, targets1))
    ref1 = _ordinal_loss_ref(logits1, targets1)
    assert jnp.allclose(loss1, ref1, atol=1e-5, rtol=1e-5), (loss1, ref1)

    # 2) Kernel path, multi-step parallel grid with a ragged last tile
    #    (exercises the pl.when-gated lane masking).
    b2 = 300
    logits2 = jax.random.normal(k3, (b2, num_classes), dtype=jnp.float32)
    targets2 = jax.random.randint(k4, (b2,), 0, num_classes, dtype=jnp.int32)
    loss2 = jax.block_until_ready(ordinal_loss(logits2, targets2, tile_n=512))
    ref2 = _ordinal_loss_ref(logits2, targets2)
    assert jnp.allclose(loss2, ref2, atol=1e-5, rtol=1e-5), (loss2, ref2)

    # 3) Module-default tiny batch -> XLA short-circuit path.
    b3 = 8
    logits3 = jax.random.normal(k5, (b3, num_classes), dtype=jnp.float32)
    targets3 = jax.random.randint(k6, (b3,), 0, num_classes, dtype=jnp.int32)
    loss3 = jax.block_until_ready(ordinal_loss(logits3, targets3))
    ref3 = _ordinal_loss_ref(logits3, targets3)
    assert jnp.allclose(loss3, ref3, atol=1e-6, rtol=1e-6), (loss3, ref3)

    print("KERNEL_OK")
</pallas_src>

<mosaic_0001>
module attributes {stable_mosaic.version = 11 : i64} {
  func.func @kernel(%arg0: i32, %arg1: memref<1x4096xf32, #tpu.memory_space<vmem>>, %arg2: memref<1x4096xi8, #tpu.memory_space<vmem>>, %arg3: memref<1x8x128xf32, #tpu.memory_space<vmem>>) attributes {dimension_semantics = [#tpu.dimension_semantics<parallel>], iteration_bounds = array<i64: 1>, scalar_prefetch = 0 : i64, scratch_operands = 0 : i64, tpu.core_type = #tpu.core_type<tc>, window_params = [{transform_indices = @transform_0, window_bounds = array<i64: 1, 4096>}, {transform_indices = @transform_1, window_bounds = array<i64: 1, 4096>}, {transform_indices = @transform_2, window_bounds = array<i64: 1, 8, 128>}]} {
    %c0 = arith.constant 0 : index
    %c0_0 = arith.constant 0 : index
    %0 = vector.load %arg1[%c0, %c0_0] : memref<1x4096xf32, #tpu.memory_space<vmem>>, vector<1x4096xf32>
    %c0_1 = arith.constant 0 : index
    %c0_2 = arith.constant 0 : index
    %1 = vector.load %arg2[%c0_1, %c0_2] : memref<1x4096xi8, #tpu.memory_space<vmem>>, vector<1x4096xi8>
    %2 = arith.extsi %1 : vector<1x4096xi8> to vector<1x4096xi32>
    %3 = tpu.iota {dimensions = array<i32: 1>} : vector<1x4096xi32>
    %c4096_i32 = arith.constant 4096 : i32
    %4 = arith.muli %arg0, %c4096_i32 : i32
    %5 = vector.broadcast %4 : i32 to vector<1x4096xi32>
    %6 = arith.addi %5, %3 : vector<1x4096xi32>
    %c3_i32 = arith.constant 3 : i32
    %7 = vector.broadcast %c3_i32 : i32 to vector<1x4096xi32>
    %8 = arith.andi %6, %7 : vector<1x4096xi32>
    %cst = arith.constant 0.000000e+00 : f32
    %9 = vector.broadcast %cst : f32 to vector<1x4096xf32>
    %10 = arith.maximumf %0, %9 : vector<1x4096xf32>
    %11 = arith.cmpi slt, %8, %2 : vector<1x4096xi32>
    %cst_3 = arith.constant 0.000000e+00 : f32
    %12 = vector.broadcast %cst_3 : f32 to vector<1x4096xf32>
    %13 = arith.select %11, %0, %12 : vector<1x4096xi1>, vector<1x4096xf32>
    %14 = arith.subf %10, %13 : vector<1x4096xf32>
    %15 = math.absf %0 : vector<1x4096xf32>
    %cst_4 = arith.constant 0.000000e+00 : f32
    %16 = vector.broadcast %cst_4 : f32 to vector<1x4096xf32>
    %17 = arith.subf %16, %15 : vector<1x4096xf32>
    %18 = math.exp %17 : vector<1x4096xf32>
    %19 = math.log1p %18 : vector<1x4096xf32>
    %20 = arith.addf %14, %19 : vector<1x4096xf32>
    %21 = vector.shape_cast %20 : vector<1x4096xf32> to vector<1x1x4096xf32>
    %cst_5 = arith.constant dense<0.000000e+00> : vector<1xf32>
    %22 = vector.multi_reduction <add>, %21, %cst_5 [1, 2] : vector<1x1x4096xf32> to vector<1xf32>
    %23 = vector.shape_cast %22 : vector<1xf32> to vector<1x1x1xf32>
    %24 = vector.extract %23[0, 0, 0] : f32 from vector<1x1x1xf32>
    %25 = vector.broadcast %24 : f32 to vector<1x8x128xf32>
    %c0_6 = arith.constant 0 : index
    %c0_7 = arith.constant 0 : index
    %c0_8 = arith.constant 0 : index
    %26 = vector.load %arg3[%c0_6, %c0_7, %c0_8] : memref<1x8x128xf32, #tpu.memory_space<vmem>>, vector<1x8x128xf32>
    tpu.vector_store %arg3[%c0_6, %c0_7, %c0_8], %25 {strides = array<i32>} : memref<1x8x128xf32, #tpu.memory_space<vmem>>, vector<1x8x128xf32>,
    return
  }
  func.func @transform_0(%arg0: i32) -> (i32, i32) {
    %c0_i32 = arith.constant 0 : i32
    %c0_i32_0 = arith.constant 0 : i32
    return %c0_i32, %arg0 : i32, i32
  }
  func.func @transform_1(%arg0: i32) -> (i32, i32) {
    %c0_i32 = arith.constant 0 : i32
    %c0_i32_0 = arith.constant 0 : i32
    return %c0_i32, %arg0 : i32, i32
  }
  func.func @transform_2(%arg0: i32) -> (i32, i32, i32) {
    %c0_i32 = arith.constant 0 : i32
    %c0_i32_0 = arith.constant 0 : i32
    %c0_i32_1 = arith.constant 0 : i32
    return %arg0, %c0_i32, %c0_i32_0 : i32, i32, i32
  }
}

</mosaic_0001>

<bundles_post_ra>
// kernel: tpu_custom_call.1
= control target key start
LH: loop header
LB: loop body
LE: loop exit
PB: predicated region body
PF: predicated region fallthrough
CT: control target
= control target key end

     0   :  { %7 = vsyncpa [#allocation3], 0  ;;  %s1929_s0 = inlined_call_operand.hbm [shape: f32[1,4096], index: 0, kind: input, shape index: {}]   ;;  %s1930_s1 = inlined_call_operand.hbm [shape: s8[1,4096], index: 1, kind: input, shape index: {}]   ;;  %s1931_s2 = inlined_call_operand.hbm [shape: f32[1,8,128], index: 2, kind: output, shape index: {}]  }
   0x1   :  { %8 = vsyncpa [#allocation6], 0 }
   0x2   :  { %9 = vsyncpa [#allocation4], 0  ;;  %s1154_s9 = smov [#allocation2]   ;;  %s1155_s11 = smov [#allocation5]  }
   0x3   :  { %s16_s10 = sshll.u32 %s1154_s9, 4  ;;  %s26_s12 = sshll.u32 %s1155_s11, 4  ;;  %s17_s10 = int_to_ptr.vmem [resolvable:$true] %s16_s10  ;;  %s27_s12 = int_to_ptr.vmem [resolvable:$true] %s26_s12 }
   0x4   :  { %s1096_s13 = scalar_lea.vmem %s17_s10, 512  ;;  %p1101_p1 = scmp.lt.s32.totalorder %s17_s10, %s17_s10 }
   0x5   :  { %p1097_p0 = scmp.ne.s32.totalorder %s17_s10, %s1096_s13  ;;  %p1102_p2 = scmp.lt.s32.totalorder %s1096_s13, %s1096_s13 }
   0x7   :  { %p1103_p3 = por %p1102_p2, %p1101_p1 }
   0x9   :  { %p1104_p4 = pnand %p1103_p3, %p1097_p0 }
   0xb   :  { %1107 = shalt.err (!%p1104_p4)
}
   0xc   :  { %19 = dma.hbm_to_vmem [thread:$0]  %s1929_s0, 512, %s17_s10, [#allocation3]  }
   0xd   :  { %s1116_s16 = scalar_lea.vmem %s27_s12, 512  ;;  %p1121_p6 = scmp.lt.s32.totalorder %s27_s12, %s27_s12 }
   0xe   :  { %p1117_p5 = scmp.ne.s32.totalorder %s27_s12, %s1116_s16  ;;  %p1122_p7 = scmp.lt.s32.totalorder %s1116_s16, %s1116_s16 }
  0x10   :  { %p1123_p8 = por %p1122_p7, %p1121_p6 }
  0x12   :  { %p1124_p9 = pnand %p1123_p8, %p1117_p5 }
  0x14   :  { %1127 = shalt.err (!%p1124_p9)
}
  0x15   :  { %29 = dma.hbm_to_vmem [thread:$0]  %s1930_s1, 512, %s27_s12, [#allocation6]  }
  0x16   :  { %1148 = dma.done.wait [#allocation3], 512  }
  0x17   :  { %1149 = vsyncadd [#allocation3], 4294966784 }
  0x18   :  { %1150 = dma.done.wait [#allocation6], 512  }
  0x19   :  { %1151 = vsyncadd [#allocation6], 4294966784  ;;  %v60_v0 = vlaneseq  ;;  %v1156_v2 = vmov 1966171168   ;;  %v1204_v13 = vld [vmem:[#allocation5] sm:$0xff]  ;;  %v1218_v18 = vld [vmem:[#allocation5 + $0x8] sm:$0xff] }
  0x1a   :  { %v556_v3 = vunpack.c.l.s4 %v1156_v2  ;;  %v1232_v23 = vld [vmem:[#allocation5 + $0x10] sm:$0xff]  ;;  %v1246_v28 = vld [vmem:[#allocation5 + $0x18] sm:$0xff]  ;;  %v44_v29 = vunpack.c.0.s8 %v1204_v13  ;;  %v45_v30 = vunpack.c.1.s8 %v1204_v13  ;;  %v46_v31 = vunpack.c.2.s8 %v1204_v13  ;;  %v1318_v44 = vld [vmem:[#allocation2] sm:$0xff]  ;;  %s1157_s0 = smov [#allocation7]  }
  0x1b   :  { %v1179_v1 = vand.u32 127, %v60_v0  ;;  %v1181_v4 = vshrl.u32 %v60_v0, 7  ;;  %v47_v32 = vunpack.c.3.s8 %v1204_v13  ;;  %v48_v33 = vunpack.c.0.s8 %v1218_v18  ;;  %v1320_v43 = vld [vmem:[#allocation2 + $0x8] sm:$0xff]  ;;  %s1056_s1 = sshll.u32 %s1157_s0, 4  ;;  %s1057_s1 = int_to_ptr.vmem [resolvable:$true] %s1056_s1 }
  0x1c   :  { %v557_v8 = vunpack.c.0.s8 %v556_v3  ;;  %v1961_v63 = vunpack.c.3.s8 %v1218_v18  ;;  %s1128_s20 = scalar_lea.vmem %s1057_s1, 128  ;;  %p1133_p11 = scmp.lt.s32.totalorder %s1057_s1, %s1057_s1 }
  0x1d   :  { %v1184_v5 = vadd.s32 128, %v1179_v1  ;;  %v1187_v6 = vadd.s32 256, %v1179_v1  ;;  %v1190_v7 = vadd.s32 384, %v1179_v1  ;;  %v1193_v9 = vadd.s32 512, %v1179_v1  ;;  %p1129_p10 = scmp.ne.s32.totalorder %s1057_s1, %s1128_s20  ;;  %p1134_p12 = scmp.lt.s32.totalorder %s1128_s20, %s1128_s20 }
  0x1e   :  { %v1196_v10 = vadd.s32 640, %v1179_v1  ;;  %v1199_v11 = vadd.s32 768, %v1179_v1  ;;  %v1202_v12 = vadd.s32 896, %v1179_v1  ;;  %v1207_v14 = vadd.s32 1024, %v1179_v1 }
  0x1f   :  { %v1210_v15 = vadd.s32 1152, %v1179_v1  ;;  %v1213_v16 = vadd.s32 1280, %v1179_v1  ;;  %v1216_v17 = vadd.s32 1408, %v1179_v1  ;;  %v1221_v19 = vadd.s32 1536, %v1179_v1  ;;  %p1135_p13 = por %p1134_p12, %p1133_p11 }
  0x20   :  { %v1224_v20 = vadd.s32 1664, %v1179_v1  ;;  %v1227_v21 = vadd.s32 1792, %v1179_v1  ;;  %v1230_v22 = vadd.s32 1920, %v1179_v1  ;;  %v1235_v24 = vadd.s32 2048, %v1179_v1 }
  0x21   :  { %v1238_v25 = vadd.s32 2176, %v1179_v1  ;;  %v1241_v26 = vadd.s32 2304, %v1179_v1  ;;  %v1244_v27 = vsub.s32 %v557_v8, %v1181_v4  ;;  %v1265_v45 = vadd.s32 2432, %v1179_v1  ;;  %p1136_p0 = pnand %p1135_p13, %p1129_p10 }
  0x22   :  { %v1268_v46 = vadd.s32 2560, %v1179_v1  ;;  %v1271_v47 = vadd.s32 2688, %v1179_v1  ;;  %v1274_v48 = vadd.s32 2816, %v1179_v1  ;;  %v1277_v49 = vadd.s32 2944, %v1179_v1 }
  0x23   :  { %v1280_v50 = vadd.s32 3072, %v1179_v1  ;;  %v1283_v51 = vadd.s32 3200, %v1179_v1  ;;  %v1286_v52 = vadd.s32 3328, %v1179_v1  ;;  %v1289_v53 = vadd.s32 3456, %v1179_v1 }
  0x24   :  { %v1292_v54 = vadd.s32 3584, %v1179_v1  ;;  %v1295_v55 = vadd.s32 3712, %v1179_v1  ;;  %v1298_v56 = vadd.s32 3840, %v1179_v1  ;;  %v1301_v57 = vadd.s32 3968, %v1179_v1 }
  0x25   :  { %1938 = vst [vmem:[#allocation11_spill] sm:$0xff] %v1286_v52  ;;  %1939 = vst [vmem:[#allocation12_spill] sm:$0xff] %v1289_v53  ;;  %v127_v58 = vand.u32 3, %v1179_v1  ;;  %v128_v59 = vand.u32 3, %v1184_v5  ;;  %v129_v60 = vand.u32 3, %v1187_v6  ;;  %v130_v61 = vand.u32 3, %v1190_v7 }
  0x26   :  { %1940 = vst [vmem:[#allocation13_spill] sm:$0xff] %v1292_v54  ;;  %1941 = vst [vmem:[#allocation14_spill] sm:$0xff] %v1295_v55  ;;  %v131_v62 = vand.u32 3, %v1193_v9  ;;  %v1333_v42 = vsub.s32 0, %v1181_v4  ;;  %v1336_v41 = vsub.s32 4, %v1181_v4  ;;  %v1356_v8 = vsub.s32 1, %v1181_v4 }
  0x27   :  { %1942 = vst [vmem:[#allocation15_spill] sm:$0xff] %v1298_v56  ;;  %1943 = vst [vmem:[#allocation16_spill] sm:$0xff] %v1301_v57  ;;  %v755_v6 = vand.u32 2147483647, %v1318_v44  ;;  %v756_v7 = vand.u32 2147483647, %v1320_v43  ;;  %v1957_v56 = vunpack.c.1.s8 %v1218_v18 }
  0x28   :  { %v166_v5 = vrot.slane %v44_v29, %v1333_v42  ;;  %v170_v9 = vrot.slane %v44_v29, %v1336_v41  ;;  %v174_v39 = vrot.slane %v45_v30, %v1333_v42  ;;  %v182_v1 = vrot.slane %v46_v31, %v1333_v42 }
  0x29   :  { %v759_v37 = vsub.f32 0.0, %v755_v6  ;;  %v760_v3 = vsub.f32 0.0, %v756_v7  ;;  %v178_v6 = vrot.slane %v45_v30, %v1336_v41  ;;  %v1368_v38 = vsub.s32 2, %v1181_v4 }
  0x2a   :  { %v1371_v29 = vsub.s32 3, %v1181_v4  ;;  %v1374_v7 = vsub.s32 5, %v1181_v4  ;;  %v1377_v36 = vsub.s32 6, %v1181_v4  ;;  %v186_v30 = vrot.slane %v46_v31, %v1336_v41 }
  0x2b   :  { %v763_v40 = vmul.f32 1.442695, %v759_v37  ;;  %v190_v37 = vrot.slane %v47_v32, %v1333_v42  ;;  %v1386_v35 = vsub.s32 7, %v1181_v4  ;;  %v194_v34 = vrot.slane %v47_v32, %v1336_v41 }
  0x2c   :  { %v198_v2 = vrot.slane %v48_v33, %v1333_v42  ;;  %vm1394_vm0 = vcmp.lt.s32.totalorder %v127_v58, %v166_v5  ;;  %v765_v31 = vmul.f32 1.442695, %v760_v3  ;;  %vm1398_vm1 = vcmp.lt.s32.totalorder %v128_v59, %v170_v9 }
  0x2d   :  { %1072 = vpow2.f32 %v763_v40  ;;  %vm1402_vm2 = vcmp.lt.s32.totalorder %v129_v60, %v174_v39  ;;  %vm1406_vm3 = vcmp.lt.s32.totalorder %v130_v61, %v178_v6  ;;  %vm1410_vm4 = vcmp.lt.s32.totalorder %v131_v62, %v182_v1  ;;  %v1436_v6 = vld [vmem:[#allocation2 + $0x10] sm:$0xff] }
  0x2e   :  { %v330_v40 = vrot.slane %v1318_v44, %v1333_v42  ;;  %v334_v58 = vrot.slane %v1318_v44, %v1356_v8  ;;  %v338_v39 = vrot.slane %v1318_v44, %v1368_v38  ;;  %v342_v59 = vrot.slane %v1318_v44, %v1371_v29 }
  0x2f   :  { %v346_v60 = vrot.slane %v1318_v44, %v1336_v41  ;;  %v350_v61 = vrot.slane %v1318_v44, %v1374_v7  ;;  %v354_v62 = vrot.slane %v1318_v44, %v1377_v36  ;;  %v358_v3 = vrot.slane %v1318_v44, %v1386_v35 }
  0x30   :  { %v1954_v1 = vand.u32 3, %v1196_v10  ;;  %v1955_v5 = vand.u32 3, %v1199_v11  ;;  %v1956_v9 = vand.u32 3, %v1202_v12  ;;  %1074 = vpow2.f32 %v765_v31 }
  0x31   :  { %v202_v57 = vrot.slane %v48_v33, %v1336_v41  ;;  %v206_v55 = vrot.slane %v1957_v56, %v1333_v42  ;;  %v1958_v10 = vmov %v1957_v56  ;;  %v1959_v11 = vunpack.c.2.s8 %v1218_v18 }
  0x32   :  { %vm296_vm5 = vcmp.lt.s32.totalorder %v1954_v1, %v186_v30  ;;  %vm297_vm6 = vcmp.lt.s32.totalorder %v1955_v5, %v190_v37  ;;  %vm298_vm7 = vcmp.lt.s32.totalorder %v1956_v9, %v194_v34  ;;  %v210_v30 = vrot.slane %v1958_v10, %v1336_v41 }
  0x33   :  { %v214_v12 = vrot.slane %v1959_v11, %v1333_v42  ;;  %v487_v34 = vsel %vm1394_vm0, %v330_v40, 0.0  ;;  %v488_v37 = vsel %vm1398_vm1, %v334_v58, 0.0  ;;  %v489_v33 = vsel %vm1402_vm2, %v338_v39, 0.0 }
  0x34   :  { %v490_v56 = vsel %vm1406_vm3, %v342_v59, 0.0  ;;  %v491_v31 = vsel %vm1410_vm4, %v346_v60, 0.0  ;;  %v492_v1 = vsel %vm296_vm5, %v350_v61, 0.0  ;;  %v493_v5 = vsel %vm297_vm6, %v354_v62, 0.0 }
  0x35   :  { %v494_v9 = vsel %vm298_vm7, %v358_v3, 0.0  ;;  %v1960_v10 = vmov %v1959_v11  ;;  %v222_v40 = vrot.slane %v1961_v63, %v1333_v42  ;;  %v1962_v4 = vmov %v1961_v63 }
  0x36   :  { %v218_v0 = vrot.slane %v1960_v10, %v1336_v41  ;;  %v226_v58 = vrot.slane %v1962_v4, %v1336_v41  ;;  %v757_v13 = vand.u32 2147483647, %v1436_v6  ;;  %v1963_v32 = vunpack.c.0.s8 %v1232_v23 }
  0x37   :  { %v1965_v61 = vunpack.c.1.s8 %v1232_v23  ;;  %v551_v11 = vcombine.low %v487_v34, %v488_v37  ;;  %v552_v10 = vcombine.low %v489_v33, %v490_v56  ;;  %v553_v63 = vcombine.low %v491_v31, %v492_v1 }
  0x38   :  { %v1473_v39 = vrot.slane %v1963_v32, %v1333_v42  ;;  %v1964_v59 = vmov %v1963_v32  ;;  %v554_v4 = vcombine.low %v493_v5, %v494_v9  ;;  %v1967_v32 = vunpack.c.2.s8 %v1232_v23 }
  0x39   :  { %v1478_v60 = vrot.slane %v1964_v59, %v1336_v41  ;;  %v1483_v62 = vrot.slane %v1965_v61, %v1333_v42  ;;  %v1966_v18 = vmov %v1965_v61  ;;  %v1969_v61 = vand.u32 3, %v1207_v14 }
  0x3a   :  { %v1488_v3 = vrot.slane %v1966_v18, %v1336_v41  ;;  %v1493_v54 = vrot.slane %v1967_v32, %v1333_v42  ;;  %v1968_v59 = vmov %v1967_v32  ;;  %v1972_v34 = vand.u32 3, %v1210_v15  ;;  %v1512_v33 = vpop.eup %1072 }
  0x3b   :  { %v1498_v53 = vrot.slane %v1968_v59, %v1336_v41  ;;  %vm1502_vm8 = vcmp.lt.s32.totalorder %v1969_v61, %v198_v2  ;;  %v1975_v56 = vand.u32 3, %v1213_v16  ;;  %v1978_v14 = vand.u32 3, %v1216_v17 }
  0x3c   :  { %vm1508_vm9 = vcmp.lt.s32.totalorder %v1972_v34, %v202_v57  ;;  %v1981_v15 = vand.u32 3, %v1221_v19  ;;  %v761_v1 = vsub.f32 0.0, %v757_v13  ;;  %v362_v16 = vrot.slane %v1320_v43, %v1333_v42 }
  0x3d   :  { %vm1516_vm10 = vcmp.lt.s32.totalorder %v1975_v56, %v206_v55  ;;  %vm1522_vm11 = vcmp.lt.s32.totalorder %v1978_v14, %v210_v30  ;;  %v366_v55 = vrot.slane %v1320_v43, %v1356_v8  ;;  %v370_v17 = vrot.slane %v1320_v43, %v1368_v38 }
  0x3e   :  { %vm1528_vm12 = vcmp.lt.s32.totalorder %v1981_v15, %v214_v12  ;;  %v771_v30 = vadd.f32 1.0, %v1512_v33  ;;  %v561_v5 = vrot.slane %v551_v11, %v1244_v27  ;;  %v568_v19 = vrot.slane %v552_v10, %v1244_v27 }
  0x3f   :  { %v575_v12 = vrot.slane %v553_v63, %v1244_v27  ;;  %v582_v9 = vrot.slane %v554_v4, %v1244_v27  ;;  %v374_v13 = vrot.slane %v1320_v43, %v1371_v29  ;;  %v378_v18 = vrot.slane %v1320_v43, %v1336_v41  ;;  %v1555_v4 = vpop.eup %1074 }
  0x40   :  { %v382_v32 = vrot.slane %v1320_v43, %v1374_v7  ;;  %1076 = vlog2.f32 %v771_v30  ;;  %v1984_v59 = vand.u32 3, %v1224_v20  ;;  %v386_v11 = vrot.slane %v1320_v43, %v1377_v36 }
  0x41   :  { %v390_v10 = vrot.slane %v1320_v43, %v1386_v35  ;;  %v767_v63 = vmul.f32 1.442695, %v761_v1  ;;  %v1985_v61 = vunpack.c.3.s8 %v1232_v23  ;;  %v1986_v56 = vand.u32 3, %v1227_v21 }
  0x42   :  { %vm304_vm13 = vcmp.lt.s32.totalorder %v1984_v59, %v218_v0  ;;  %v1987_v20 = vand.u32 3, %v1230_v22  ;;  %v495_v0 = vsel %vm1502_vm8, %v362_v16, 0.0  ;;  %v496_v14 = vsel %vm1508_vm9, %v366_v55, 0.0  ;;  %v1578_v16 = vld [vmem:[#allocation2 + $0x18] sm:$0xff] }
  0x43   :  { %v1560_v34 = vrot.slane %v1985_v61, %v1333_v42  ;;  %vm305_vm14 = vcmp.lt.s32.totalorder %v1986_v56, %v222_v40  ;;  %v497_v15 = vsel %vm1516_vm10, %v370_v17, 0.0  ;;  %v583_v1 = vcombine.low %v561_v5, %v568_v19 }
  0x44   :  { %vm306_vm15 = vcmp.lt.s32.totalorder %v1987_v20, %v226_v58  ;;  %v584_v30 = vcombine.low %v575_v12, %v582_v9  ;;  %v498_v59 = vsel %vm1522_vm11, %v374_v13, 0.0  ;;  %v499_v21 = vsel %vm1528_vm12, %v378_v18, 0.0 }
  0x45   :  { %v500_v40 = vsel %vm304_vm13, %v382_v32, 0.0  ;;  %v774_v22 = vmul.f32 -0.5, %v1512_v33  ;;  %v501_v58 = vsel %vm305_vm14, %v386_v11, 0.0  ;;  %v502_v52 = vsel %vm306_vm15, %v390_v10, 0.0 }
  0x46   :  { %1078 = vpow2.f32 %v767_v63  ;;  %v780_v37 = vadd.f32 1.0, %v1555_v4  ;;  %v1988_v31 = vmov %v1985_v61  ;;  %v1989_v2 = vunpack.c.0.s8 %v1246_v28 }
  0x47   :  { %v258_v55 = vrot.slane %v1988_v31, %v1336_v41  ;;  %v1991_v19 = vunpack.c.1.s8 %v1246_v28  ;;  %v591_v13 = vrot.slane %v583_v1, %v1244_v27  ;;  %v598_v18 = vrot.slane %v584_v30, %v1244_v27 }
  0x48   :  { %v1586_v17 = vrot.slane %v1989_v2, %v1333_v42  ;;  %v1990_v57 = vmov %v1989_v2  ;;  %v600_v32 = vcombine.low %v495_v0, %v496_v14  ;;  %v601_v11 = vcombine.low %v497_v15, %v498_v59 }
  0x49   :  { %v1591_v5 = vrot.slane %v1990_v57, %v1336_v41  ;;  %v1596_v12 = vrot.slane %v1991_v19, %v1333_v42  ;;  %v1992_v9 = vmov %v1991_v19  ;;  %v602_v10 = vcombine.low %v499_v21, %v500_v40  ;;  %v2026_v19 = vld [vmem:[#allocation11_spill] sm:$0xff] }
  0x4a   :  { %v1601_v23 = vrot.slane %v1992_v9, %v1336_v41  ;;  %v603_v63 = vcombine.low %v501_v58, %v502_v52  ;;  %v775_v61 = vadd.f32 1.0, %v774_v22  ;;  %v1993_v56 = vunpack.c.2.s8 %v1246_v28 }
  0x4b   :  { %v758_v31 = vand.u32 2147483647, %v1578_v16  ;;  %v777_v2 = vand.u32 2147483647, %v1512_v33  ;;  %1080 = vlog2.f32 %v780_v37  ;;  %v1995_v0 = vand.u32 3, %v1235_v24 }
  0x4c   :  { %v1608_v20 = vrot.slane %v1993_v56, %v1333_v42  ;;  %v1994_v1 = vmov %v1993_v56  ;;  %v1998_v15 = vand.u32 3, %v1238_v25  ;;  %v2001_v59 = vand.u32 3, %v1241_v26 }
  0x4d   :  { %v1615_v57 = vrot.slane %v1994_v1, %v1336_v41  ;;  %vm1620_vm0 = vcmp.lt.s32.totalorder %v1995_v0, %v1473_v39  ;;  %v2004_v24 = vand.u32 3, %v1265_v45  ;;  %v2007_v25 = vand.u32 3, %v1268_v46  ;;  %v1077_v58 = vpop.eup %1076 }
  0x4e   :  { %vm1627_vm1 = vcmp.lt.s32.totalorder %v1998_v15, %v1478_v60  ;;  %vm1634_vm2 = vcmp.lt.s32.totalorder %v2001_v59, %v1483_v62  ;;  %v599_v40 = vcombine.low %v591_v13, %v598_v18  ;;  %v610_v26 = vrot.slane %v600_v32, %v1244_v27 }
  0x4f   :  { %vm1641_vm3 = vcmp.lt.s32.totalorder %v2004_v24, %v1488_v3  ;;  %vm1648_vm4 = vcmp.lt.s32.totalorder %v2007_v25, %v1493_v54  ;;  %v617_v62 = vrot.slane %v601_v11, %v1244_v27  ;;  %v624_v22 = vrot.slane %v602_v10, %v1244_v27 }
  0x50   :  { %v631_v45 = vrot.slane %v603_v63, %v1244_v27  ;;  %v776_v3 = vmul.f32 %v1512_v33, %v775_v61  ;;  %v2010_v52 = vand.u32 3, %v1271_v47  ;;  %v394_v54 = vrot.slane %v1436_v6, %v1333_v42 }
  0x51   :  { %v762_v37 = vsub.f32 0.0, %v758_v31  ;;  %vm1666_vm6 = vcmp.lt.f32.partialorder %v777_v2, 0.0004427343  ;;  %v398_v9 = vrot.slane %v1436_v6, %v1356_v8  ;;  %v402_v33 = vrot.slane %v1436_v6, %v1368_v38 }
  0x52   :  { %vm1660_vm5 = vcmp.lt.s32.totalorder %v2010_v52, %v1498_v53  ;;  %v406_v47 = vrot.slane %v1436_v6, %v1371_v29  ;;  %v773_v53 = vmul.f32 0.6931472, %v1077_v58  ;;  %v410_v13 = vrot.slane %v1436_v6, %v1336_v41 }
  0x53   :  { %v414_v18 = vrot.slane %v1436_v6, %v1374_v7  ;;  %v418_v32 = vrot.slane %v1436_v6, %v1377_v36  ;;  %v2015_v11 = vmax.f32 %v1318_v44, 0.0  ;;  %v422_v63 = vrot.slane %v1436_v6, %v1386_v35  ;;  %v1694_v15 = vpop.eup %1078 }
  0x54   :  { %v632_v61 = vcombine.low %v610_v26, %v617_v62  ;;  %v633_v56 = vcombine.low %v624_v22, %v631_v45  ;;  %v779_v31 = vsel %vm1666_vm6, %v776_v3, %v773_v53  ;;  %vm975_vm7 = vcmask 1040384  }
  0x55   :  { %v751_v10 = vsub.f32 %v2015_v11, %v599_v40  ;;  %v2016_v2 = vand.u32 3, %v1274_v48  ;;  %v2017_v1 = vand.u32 3, %v1277_v49  ;;  %v769_v0 = vmul.f32 1.442695, %v762_v37  ;;  %v2038_v11 = vld [vmem:[#allocation14_spill] sm:$0xff] }
  0x56   :  { %v783_v44 = vmul.f32 -0.5, %v1555_v4  ;;  %v2018_v59 = vunpack.c.3.s8 %v1246_v28  ;;  %v503_v25 = vsel %vm1620_vm0, %v394_v54, 0.0  ;;  %v504_v40 = vsel %vm1627_vm1, %v398_v9, 0.0 }
  0x57   :  { %vm313_vm8 = vcmp.lt.s32.totalorder %v2016_v2, %v1560_v34  ;;  %vm314_vm9 = vcmp.lt.s32.totalorder %v2017_v1, %v258_v55  ;;  %v505_v48 = vsel %vm1634_vm2, %v402_v33, 0.0  ;;  %v506_v49 = vsel %vm1641_vm3, %v406_v47, 0.0 }
  0x58   :  { %v286_v24 = vrot.slane %v2018_v59, %v1333_v42  ;;  %v507_v34 = vsel %vm1648_vm4, %v410_v13, 0.0  ;;  %v508_v55 = vsel %vm1660_vm5, %v414_v18, 0.0  ;;  %v1711_v26 = vadd.f32 %v779_v31, %v751_v10  ;;  %v1081_v3 = vpop.eup %1080  ;;  %v2034_v18 = vld [vmem:[#allocation13_spill] sm:$0xff] }
  0x59   :  { %v509_v62 = vsel %vm313_vm8, %v418_v32, 0.0  ;;  %v510_v14 = vsel %vm314_vm9, %v422_v63, 0.0  ;;  %v640_v22 = vrot.slane %v632_v61, %v1244_v27  ;;  %v647_v30 = vrot.slane %v633_v56, %v1244_v27  ;;  %v2042_v63 = vld [vmem:[#allocation15_spill] sm:$0xff] }
  0x5a   :  { %v2019_v21 = vmov %v2018_v59  ;;  %1082 = vpow2.f32 %v769_v0  ;;  %v784_v39 = vadd.f32 1.0, %v783_v44  ;;  %v789_v60 = vadd.f32 1.0, %v1694_v15  ;;  %v2046_v44 = vld [vmem:[#allocation16_spill] sm:$0xff] }
  0x5b   :  { %v290_v45 = vrot.slane %v2019_v21, %v1336_v41  ;;  %v2020_v58 = vand.u32 3, %v1280_v50  ;;  %v2023_v46 = vand.u32 3, %v1283_v51  ;;  %v649_v28 = vcombine.low %v503_v25, %v504_v40  ;;  %v2030_v50 = vld [vmem:[#allocation12_spill] sm:$0xff] }
  0x5c   :  { %v786_v37 = vand.u32 2147483647, %v1555_v4  ;;  %v2027_v9 = vand.u32 3, %v2026_v19  ;;  %v650_v51 = vcombine.low %v505_v48, %v506_v49  ;;  %v652_v53 = vcombine.low %v509_v62, %v510_v14 }
  0x5d   :  { %vm1722_vm10 = vcmp.lt.s32.totalorder %v2020_v58, %v1586_v17  ;;  %vm1729_vm11 = vcmp.lt.s32.totalorder %v2023_v46, %v1591_v5  ;;  %v2031_v17 = vand.u32 3, %v2030_v50  ;;  %v651_v5 = vcombine.low %v507_v34, %v508_v55 }
  0x5e   :  { %vm1737_vm12 = vcmp.lt.s32.totalorder %v2027_v9, %v1596_v12  ;;  %v818_v13 = vrot.slane %v1711_v26, %v1333_v42  ;;  %v2035_v32 = vand.u32 3, %v2034_v18  ;;  %v2039_v10 = vand.u32 3, %v2038_v11 }
  0x5f   :  { %vm1744_vm13 = vcmp.lt.s32.totalorder %v2031_v17, %v1601_v23  ;;  %v2043_v61 = vand.u32 3, %v2042_v63  ;;  %v648_v31 = vcombine.low %v640_v22, %v647_v30  ;;  %v826_v2 = vrot.slane %v1711_v26, %v1368_v38 }
  0x60   :  { %vm1753_vm14 = vcmp.lt.s32.totalorder %v2035_v32, %v1608_v20  ;;  %vm1760_vm15 = vcmp.lt.s32.totalorder %v2039_v10, %v1615_v57  ;;  %v822_v20 = vrot.slane %v1711_v26, %v1356_v8  ;;  %v426_v1 = vrot.slane %v1578_v16, %v1333_v42 }
  0x61   :  { %vm1766_vm0 = vcmp.lt.s32.totalorder %v2043_v61, %v286_v24  ;;  %v782_v57 = vmul.f32 0.6931472, %v1081_v3  ;;  %v785_v0 = vmul.f32 %v1555_v4, %v784_v39  ;;  %1084 = vlog2.f32 %v789_v60 }
  0x62   :  { %v2047_v59 = vand.u32 3, %v2046_v44  ;;  %v430_v25 = vrot.slane %v1578_v16, %v1356_v8  ;;  %v659_v40 = vrot.slane %v649_v28, %v1244_v27  ;;  %vm1786_vm2 = vcmp.lt.f32.partialorder %v786_v37, 0.0004427343 }
  0x63   :  { %v830_v49 = vrot.slane %v1711_v26, %v1371_v29  ;;  %v666_v4 = vrot.slane %v650_v51, %v1244_v27  ;;  %v673_v34 = vrot.slane %v651_v5, %v1244_v27  ;;  %v680_v55 = vrot.slane %v652_v53, %v1244_v27 }
  0x64   :  { %vm1779_vm1 = vcmp.lt.s32.totalorder %v2047_v59, %v290_v45  ;;  %v976_v62 = vsel %vm975_vm7, %v818_v13, 0.0  ;;  %v2052_v14 = vmax.f32 %v1320_v43, 0.0  ;;  %v834_v30 = vrot.slane %v1711_v26, %v1336_v41 }
  0x65   :  { %v977_v21 = vsel %vm975_vm7, %v822_v20, 0.0  ;;  %v979_v45 = vsel %vm975_vm7, %v826_v2, 0.0  ;;  %v434_v39 = vrot.slane %v1578_v16, %v1368_v38  ;;  %v438_v60 = vrot.slane %v1578_v16, %v1371_v29 }
  0x66   :  { %v752_v22 = vsub.f32 %v2052_v14, %v648_v31  ;;  %v788_v3 = vsel %vm1786_vm2, %v785_v0, %v782_v57  ;;  %v978_v58 = vadd.f32 %v977_v21, %v976_v62  ;;  %v442_v43 = vrot.slane %v1578_v16, %v1336_v41 }
  0x67   :  { %v446_v46 = vrot.slane %v1578_v16, %v1374_v7  ;;  %v838_v28 = vrot.slane %v1711_v26, %v1374_v7  ;;  %v981_v37 = vsel %vm975_vm7, %v830_v49, 0.0  ;;  %v450_v19 = vrot.slane %v1578_v16, %v1377_v36  ;;  %v1829_v63 = vpop.eup %1082 }
  0x68   :  { %v454_v9 = vrot.slane %v1578_v16, %v1386_v35  ;;  %v681_v50 = vcombine.low %v659_v40, %v666_v4  ;;  %v980_v17 = vadd.f32 %v979_v45, %v978_v58  ;;  %v682_v51 = vcombine.low %v673_v34, %v680_v55 }
  0x69   :  { %v1819_v5 = vadd.f32 %v788_v3, %v752_v22  ;;  %v842_v53 = vrot.slane %v1711_v26, %v1377_v36  ;;  %v983_v13 = vsel %vm975_vm7, %v834_v30, 0.0  ;;  %v511_v18 = vsel %vm1722_vm10, %v426_v1, 0.0 }
  0x6a   :  { %v512_v32 = vsel %vm1729_vm11, %v430_v25, 0.0  ;;  %v792_v11 = vmul.f32 -0.5, %v1694_v15  ;;  %v982_v10 = vadd.f32 %v981_v37, %v980_v17  ;;  %v513_v61 = vsel %vm1737_vm12, %v434_v39, 0.0 }
  0x6b   :  { %v514_v31 = vsel %vm1744_vm13, %v438_v60, 0.0  ;;  %v846_v20 = vrot.slane %v1711_v26, %v1386_v35  ;;  %v985_v52 = vsel %vm975_vm7, %v838_v28, 0.0  ;;  %v515_v54 = vsel %vm1753_vm14, %v442_v43, 0.0 }
  0x6c   :  { %v516_v2 = vsel %vm1760_vm15, %v446_v46, 0.0  ;;  %v517_v1 = vsel %vm1766_vm0, %v450_v19, 0.0  ;;  %v984_v57 = vadd.f32 %v983_v13, %v982_v10  ;;  %v689_v33 = vrot.slane %v681_v50, %v1244_v27 }
  0x6d   :  { %v696_v47 = vrot.slane %v682_v51, %v1244_v27  ;;  %v850_v0 = vrot.slane %v1819_v5, %v1333_v42  ;;  %v987_v26 = vsel %vm975_vm7, %v842_v53, 0.0  ;;  %v518_v12 = vsel %vm1779_vm1, %v454_v9, 0.0 }
  0x6e   :  { %v793_v44 = vadd.f32 1.0, %v792_v11  ;;  %v798_v23 = vadd.f32 1.0, %v1829_v63  ;;  %v986_v59 = vadd.f32 %v985_v52, %v984_v57  ;;  %v1085_v25 = vpop.eup %1084  ;;  %v161_v56 = vmax.f32 %v1436_v6, 0.0 }
  0x6f   :  { %v795_v40 = vand.u32 2147483647, %v1694_v15  ;;  %v854_v48 = vrot.slane %v1819_v5, %v1356_v8  ;;  %v989_v49 = vsel %vm975_vm7, %v846_v20, 0.0  ;;  %v698_v4 = vcombine.low %v511_v18, %v512_v32 }
  0x70   :  { %v699_v34 = vcombine.low %v513_v61, %v514_v31  ;;  %v700_v55 = vcombine.low %v515_v54, %v516_v2  ;;  %v988_v62 = vadd.f32 %v987_v26, %v986_v59  ;;  %v697_v24 = vcombine.low %v689_v33, %v696_v47 }
  0x71   :  { %v701_v14 = vcombine.low %v517_v1, %v518_v12  ;;  %v858_v22 = vrot.slane %v1819_v5, %v1368_v38  ;;  %v991_v30 = vsel %vm975_vm7, %v850_v0, 0.0  ;;  %v791_v21 = vmul.f32 0.6931472, %v1085_v25 }
  0x72   :  { %v794_v6 = vmul.f32 %v1694_v15, %v793_v44  ;;  %1086 = vlog2.f32 %v798_v23  ;;  %v990_v45 = vadd.f32 %v989_v49, %v988_v62  ;;  %vm1861_vm3 = vcmp.lt.f32.partialorder %v795_v40, 0.0004427343 }
  0x73   :  { %v862_v60 = vrot.slane %v1819_v5, %v1371_v29  ;;  %v993_v3 = vsel %vm975_vm7, %v854_v48, 0.0  ;;  %v708_v58 = vrot.slane %v698_v4, %v1244_v27  ;;  %v715_v43 = vrot.slane %v699_v34, %v1244_v27 }
  0x74   :  { %v722_v46 = vrot.slane %v700_v55, %v1244_v27  ;;  %v992_v28 = vadd.f32 %v991_v30, %v990_v45  ;;  %v729_v15 = vrot.slane %v701_v14, %v1244_v27  ;;  %v753_v37 = vsub.f32 %v161_v56, %v697_v24 }
  0x75   :  { %v866_v19 = vrot.slane %v1819_v5, %v1336_v41  ;;  %v995_v9 = vsel %vm975_vm7, %v858_v22, 0.0  ;;  %v797_v50 = vsel %vm1861_vm3, %v794_v6, %v791_v21  ;;  %v870_v51 = vrot.slane %v1819_v5, %v1374_v7 }
  0x76   :  { %v994_v17 = vadd.f32 %v993_v3, %v992_v28  ;;  %v997_v53 = vsel %vm975_vm7, %v862_v60, 0.0  ;;  %v730_v13 = vcombine.low %v708_v58, %v715_v43  ;;  %v731_v32 = vcombine.low %v722_v46, %v729_v15 }
  0x77   :  { %v809_v11 = vadd.f32 %v797_v50, %v753_v37  ;;  %v874_v10 = vrot.slane %v1819_v5, %v1377_v36  ;;  %v999_v61 = vsel %vm975_vm7, %v866_v19, 0.0  ;;  %v801_v31 = vmul.f32 -0.5, %v1829_v63 }
  0x78   :  { %v996_v18 = vadd.f32 %v995_v9, %v994_v17  ;;  %v878_v52 = vrot.slane %v1819_v5, %v1386_v35  ;;  %v1001_v54 = vsel %vm975_vm7, %v870_v51, 0.0  ;;  %v738_v1 = vrot.slane %v730_v13, %v1244_v27 }
  0x79   :  { %v745_v57 = vrot.slane %v731_v32, %v1244_v27  ;;  %v882_v33 = vrot.slane %v809_v11, %v1333_v42  ;;  %v1003_v47 = vsel %vm975_vm7, %v874_v10, 0.0  ;;  %v802_v0 = vadd.f32 1.0, %v801_v31 }
  0x7a   :  { %v998_v20 = vadd.f32 %v997_v53, %v996_v18  ;;  %v804_v44 = vand.u32 2147483647, %v1829_v63  ;;  %v886_v23 = vrot.slane %v809_v11, %v1356_v8  ;;  %v1005_v5 = vsel %vm975_vm7, %v878_v52, 0.0 }
  0x7b   :  { %v162_v25 = vmax.f32 %v1578_v16, 0.0  ;;  %v746_v56 = vcombine.low %v738_v1, %v745_v57  ;;  %v890_v40 = vrot.slane %v809_v11, %v1368_v38  ;;  %v1007_v27 = vsel %vm975_vm7, %v882_v33, 0.0 }
  0x7c   :  { %v1000_v2 = vadd.f32 %v999_v61, %v998_v20  ;;  %v803_v49 = vmul.f32 %v1829_v63, %v802_v0  ;;  %vm805_vm4 = vcmp.lt.f32.partialorder %v804_v44, 0.0004427343  ;;  %v894_v34 = vrot.slane %v809_v11, %v1371_v29 }
  0x7d   :  { %v1009_v55 = vsel %vm975_vm7, %v886_v23, 0.0  ;;  %v754_v24 = vsub.f32 %v162_v25, %v746_v56  ;;  %v898_v14 = vrot.slane %v809_v11, %v1336_v41  ;;  %v1011_v16 = vsel %vm975_vm7, %v890_v40, 0.0 }
  0x7e   :  { %v1002_v26 = vadd.f32 %v1001_v54, %v1000_v2  ;;  %v902_v21 = vrot.slane %v809_v11, %v1374_v7  ;;  %v1013_v6 = vsel %vm975_vm7, %v894_v34, 0.0  ;;  %v906_v39 = vrot.slane %v809_v11, %v1377_v36 }
  0x7f   :  { %v1087_v12 = vpop.eup %1086  ;;  %v1015_v60 = vsel %vm975_vm7, %v898_v14, 0.0  ;;  %v910_v58 = vrot.slane %v809_v11, %v1386_v35 }
  0x80   :  { %v1004_v59 = vadd.f32 %v1003_v47, %v1002_v26  ;;  %v800_v48 = vmul.f32 0.6931472, %v1087_v12  ;;  %v1017_v43 = vsel %vm975_vm7, %v902_v21, 0.0  ;;  %v1019_v15 = vsel %vm975_vm7, %v906_v39, 0.0 }
  0x81   :  { %v1021_v9 = vsel %vm975_vm7, %v910_v58, 0.0 }
  0x82   :  { %v1006_v4 = vadd.f32 %v1005_v5, %v1004_v59  ;;  %v806_v22 = vsel %vm805_vm4, %v803_v49, %v800_v48 }
  0x83   :  { %v810_v63 = vadd.f32 %v806_v22, %v754_v24 }
  0x84   :  { %v1008_v62 = vadd.f32 %v1007_v27, %v1006_v4 }
  0x85   :  { %v914_v28 = vrot.slane %v810_v63, %v1333_v42  ;;  %v918_v19 = vrot.slane %v810_v63, %v1356_v8  ;;  %v922_v17 = vrot.slane %v810_v63, %v1368_v38  ;;  %v926_v13 = vrot.slane %v810_v63, %v1371_v29 }
  0x86   :  { %v1010_v30 = vadd.f32 %v1009_v55, %v1008_v62  ;;  %v930_v42 = vrot.slane %v810_v63, %v1336_v41  ;;  %v934_v8 = vrot.slane %v810_v63, %v1374_v7  ;;  %v938_v38 = vrot.slane %v810_v63, %v1377_v36 }
  0x87   :  { %v1023_v51 = vsel %vm975_vm7, %v914_v28, 0.0  ;;  %v1025_v18 = vsel %vm975_vm7, %v918_v19, 0.0  ;;  %v1027_v11 = vsel %vm975_vm7, %v922_v17, 0.0  ;;  %v1029_v61 = vsel %vm975_vm7, %v926_v13, 0.0 }
  0x88   :  { %v1012_v45 = vadd.f32 %v1011_v16, %v1010_v30  ;;  %v1031_v20 = vsel %vm975_vm7, %v930_v42, 0.0  ;;  %v942_v29 = vrot.slane %v810_v63, %v1386_v35  ;;  %v1033_v54 = vsel %vm975_vm7, %v934_v8, 0.0 }
  0x89   :  { %v1035_v41 = vsel %vm975_vm7, %v938_v38, 0.0 }
  0x8a   :  { %v1014_v3 = vadd.f32 %v1013_v6, %v1012_v45  ;;  %v1037_v57 = vsel %vm975_vm7, %v942_v29, 0.0 }
  0x8c   :  { %v1016_v46 = vadd.f32 %v1015_v60, %v1014_v3 }
  0x8e   :  { %v1018_v37 = vadd.f32 %v1017_v43, %v1016_v46 }
  0x90   :  { %v1020_v50 = vadd.f32 %v1019_v15, %v1018_v37 }
  0x92   :  { %v1022_v53 = vadd.f32 %v1021_v9, %v1020_v50 }
  0x94   :  { %v1024_v32 = vadd.f32 %v1023_v51, %v1022_v53 }
  0x96   :  { %v1026_v10 = vadd.f32 %v1025_v18, %v1024_v32 }
  0x98   :  { %v1028_v31 = vadd.f32 %v1027_v11, %v1026_v10 }
  0x9a   :  { %v1030_v52 = vadd.f32 %v1029_v61, %v1028_v31 }
  0x9c   :  { %v1032_v2 = vadd.f32 %v1031_v20, %v1030_v52 }
  0x9e   :  { %v1034_v1 = vadd.f32 %v1033_v54, %v1032_v2 }
  0xa0   :  { %v1036_v33 = vadd.f32 %v1035_v41, %v1034_v1 }
  0xa2   :  { %v1038_v7 = vadd.f32 %v1037_v57, %v1036_v33 }
  0xa4   :  { %1039 = vadd.xlane.f32.xlu0 %v1038_v7 }
 0x12d   :  { %v1040_v47 = vpop.xlane.xlu0 %1039 }
 0x12e   :  { %v1041_v0 = vrot.slane %v1040_v47, 4 }
 0x130   :  { %v1042_v26 = vadd.f32 %v1041_v0, %v1040_v47 }
 0x132   :  { %v1043_v36 = vrot.slane %v1042_v26, 2 }
 0x134   :  { %v1044_v12 = vadd.f32 %v1043_v36, %v1042_v26 }
 0x136   :  { %v1045_v44 = vrot.slane %v1044_v12, 1 }
 0x138   :  { %v1046_v23 = vadd.f32 %v1045_v44, %v1044_v12 }
 0x13a   :  { %1066 = vpush %v1046_v23 }
 0x16b   :  { %s1067_s19 = spop %1066 }
 0x16c   :  { %v1048_v35 = vstv %s1067_s19 }
 0x16d   :  { %1049 = vst [vmem:[#allocation7] sm:$0xff] %v1048_v35 }
 0x16e   :  { %1139 = shalt.err (!%p1136_p0)
}
 0x16f   :  { %1059 = dma.vmem_to_hbm [thread:$0]  %s1057_s1, 128, %s1931_s2, [#allocation4]  }
 0x170   :  { %1152 = dma.done.wait [#allocation4], 128  }
 0x171   :  { %1153 = vsyncadd [#allocation4], 4294967168 }
 0x172   :  { %1063 = vsyncpa [#allocation3], 1 }
 0x173   :  { %1064 = vsyncpa [#allocation6], 1 }
 0x174   :  { %1065 = vsyncpa [#allocation4], 1 }

</bundles_post_ra>
